<compile_context>
chip_gen: v7x
topology: tpu7x:2x2x1
jax: 0.10.0
libtpu: 0.0.40
codegen_flags: <defaults>
</compile_context>

<pallas_src>
import jax
import jax.numpy as jnp
from jax import lax
from jax.experimental import pallas as pl
from jax.experimental.pallas import tpu as pltpu

TAU = 0.01  # matches CIRPlus default tau
_MIB = 1024 * 1024


def _vmem_limit_bytes():
    """Generation-aware scoped-VMEM budget (leave ~24 MiB for compiler scratch)."""
    try:
        cap = int(getattr(pltpu.get_tpu_info(), "vmem_capacity_bytes"))
    except Exception:
        cap = 64 * _MIB  # conservative (v7x per-TC)
    return int(min(max(cap - 24 * _MIB, 32 * _MIB), 112 * _MIB))


_VMEM_LIMIT = _vmem_limit_bytes()


def _pick_tile(dim, cap, align):
    """Largest multiple of `align` that divides `dim` and is <= cap, else full dim.

    Callers pad `dim` to a multiple of `align` first, so the full-dim fallback
    can only trigger when dim <= cap (never a VMEM-blowing block).
    """
    if dim <= cap:
        return dim
    t = (cap // align) * align
    while t >= align:
        if dim % t == 0:
            return t
        t -= align
    return dim


# ---------------------------------------------------------------------------
# Kernel 1: tiled K-accumulating matmul (stand-in encoder projection)
# ---------------------------------------------------------------------------
def _matmul_kernel(x_ref, w_ref, o_ref, acc_ref):
    @pl.when(pl.program_id(2) == 0)
    def _():
        acc_ref[...] = jnp.zeros_like(acc_ref)

    acc_ref[...] += jnp.dot(x_ref[...], w_ref[...],
                            preferred_element_type=jnp.float32)

    @pl.when(pl.program_id(2) == pl.num_programs(2) - 1)
    def _():
        o_ref[...] = acc_ref[...].astype(o_ref.dtype)


def pallas_matmul(x, w, *, out_dtype=jnp.float32):
    """x:[M,K] @ w:[K,N] -> [M,N] (bf16 MXU operands, f32 accumulation)."""
    M, K = x.shape
    K2, N = w.shape
    assert K == K2
    if x.dtype != jnp.bfloat16:
        x = x.astype(jnp.bfloat16)
    if w.dtype != jnp.bfloat16:
        w = w.astype(jnp.bfloat16)

    # Pad to (16, 128) alignment so tile selection always finds aligned divisors.
    Mp = -(-M // 16) * 16
    Kp = -(-K // 128) * 128
    Np = -(-N // 128) * 128
    if Mp != M or Kp != K:
        x = jnp.pad(x, ((0, Mp - M), (0, Kp - K)))
    if Kp != K or Np != N:
        w = jnp.pad(w, ((0, Kp - K), (0, Np - N)))

    # Big M tiles amortize w re-streaming + per-step overhead; keep >=2 M blocks
    # when possible so the 'parallel' M axis can span both v7x TensorCores.
    tm_cap = 512
    if Mp >= 64:
        tm_cap = min(tm_cap, max(32, Mp // 2))
    tm = _pick_tile(Mp, tm_cap, 16)
    tk = _pick_tile(Kp, 1024, 128)
    tn = _pick_tile(Np, 256, 128)
    grid = (Mp // tm, Np // tn, Kp // tk)

    out = pl.pallas_call(
        _matmul_kernel,
        out_shape=jax.ShapeDtypeStruct((Mp, Np), out_dtype),
        grid_spec=pltpu.PrefetchScalarGridSpec(
            num_scalar_prefetch=0,
            grid=grid,
            in_specs=[pl.BlockSpec((tm, tk), lambda i, j, k: (i, k)),
                      pl.BlockSpec((tk, tn), lambda i, j, k: (k, j))],
            out_specs=pl.BlockSpec((tm, tn), lambda i, j, k: (i, j)),
            scratch_shapes=[pltpu.VMEM((tm, tn), jnp.float32)]),
        compiler_params=pltpu.CompilerParams(
            dimension_semantics=("parallel", "parallel", "arbitrary"),
            vmem_limit_bytes=_VMEM_LIMIT),
    )(x, w)
    if Mp != M or Np != N:
        out = out[:M, :N]
    return out


# ---------------------------------------------------------------------------
# Kernel 2: fused text-projection + combiner + normalize + InfoNCE loss,
#           tiled over query rows (target half stays resident in VMEM).
# ---------------------------------------------------------------------------
def _cirplus_loss_kernel(refer_ref, tpos_ref, tall_ref, emb_ref, wtxt_ref,
                         part_ref):
    eps = 1e-12                      # F.normalize default eps (clamp on the norm)
    inv_tau = jnp.float32(1.0 / TAU)

    # stand-in encode_text projection fused in (bf16 MXU, f32 accumulation)
    text_feats = jnp.dot(emb_ref[...], wtxt_ref[...],
                         preferred_element_type=jnp.float32)      # (tq, D) f32

    # combining_function = element_wise_sum, then F.normalize (f32 VPU + EUP rsqrt)
    q = refer_ref[...] + text_feats
    q = q * lax.rsqrt(jnp.maximum(jnp.sum(q * q, axis=-1, keepdims=True),
                                  eps * eps))

    t_all = tall_ref[...]                                          # (B, D) f32
    t_all = t_all * lax.rsqrt(jnp.maximum(
        jnp.sum(t_all * t_all, axis=-1, keepdims=True), eps * eps))

    t_pos = tpos_ref[...]                                          # (tq, D) f32
    t_pos = t_pos * lax.rsqrt(jnp.maximum(
        jnp.sum(t_pos * t_pos, axis=-1, keepdims=True), eps * eps))

    # logits = q_norm @ t_norm^T / tau — bf16 MXU operands, f32 accumulation,
    # 1/tau applied to the f32 accumulator (never folded into bf16 operands).
    q_b = q.astype(jnp.bfloat16)
    logits = lax.dot_general(q_b, t_all.astype(jnp.bfloat16),
                             (((1,), (1,)), ((), ())),
                             preferred_element_type=jnp.float32) * inv_tau

    # positives: labels = arange(B), i.e. row-wise dot with the matching target
    # tile (uses the same bf16-rounded operands so it matches diag(logits)).
    pos = jnp.sum(q_b.astype(jnp.float32) *
                  t_pos.astype(jnp.bfloat16).astype(jnp.float32),
                  axis=-1, keepdims=True) * inv_tau                # (tq, 1)

    # stable log-sum-exp per row (f32)
    m = jnp.max(logits, axis=-1, keepdims=True)
    lse = m + jnp.log(jnp.sum(jnp.exp(logits - m), axis=-1, keepdims=True))

    # per-tile partial sum of CE terms -> SMEM; mean reduction happens outside
    part_ref[0, 0] = jnp.sum(lse - pos)


def pallas_cirplus_bbc_loss(both_feats, emb, w_txt):
    """both_feats:[2B,D] (refer rows 0:B, target rows B:2B), emb:[B,E], w_txt:[E,D]."""
    M2, D = both_feats.shape
    B = M2 // 2
    E = emb.shape[1]
    if both_feats.dtype != jnp.float32:
        both_feats = both_feats.astype(jnp.float32)
    if emb.dtype != jnp.bfloat16:
        emb = emb.astype(jnp.bfloat16)
    if w_txt.dtype != jnp.bfloat16:
        w_txt = w_txt.astype(jnp.bfloat16)

    # query-row tile: multiple of 8 dividing B, capped at 256; prefer >=2 tiles
    # so the grid can span both v7x TensorCores and pipeline the BxB exp work.
    tq = _pick_tile(B, 256, 8)
    if tq == B and B >= 16:
        tq = _pick_tile(B, B // 2, 8)
    n_q = B // tq
    tgt_blk0 = B // tq  # block index (in tq-row units) where the target half starts

    parts = pl.pallas_call(
        _cirplus_loss_kernel,
        out_shape=jax.ShapeDtypeStruct((n_q, 1), jnp.float32),
        grid_spec=pltpu.PrefetchScalarGridSpec(
            num_scalar_prefetch=0,
            grid=(n_q,),
            in_specs=[
                pl.BlockSpec((tq, D), lambda i: (i, 0)),             # refer rows tile
                pl.BlockSpec((tq, D), lambda i: (tgt_blk0 + i, 0)),  # matching target rows (positives)
                pl.BlockSpec((B, D), lambda i: (1, 0)),              # full target half (resident)
                pl.BlockSpec((tq, E), lambda i: (i, 0)),             # pooled text emb tile
                pl.BlockSpec((E, D), lambda i: (0, 0)),              # text projection weight (resident)
            ],
            out_specs=pl.BlockSpec((1, 1), lambda i: (i, 0),
                                   memory_space=pltpu.MemorySpace.SMEM)),
        compiler_params=pltpu.CompilerParams(
            dimension_semantics=("parallel",),
            vmem_limit_bytes=_VMEM_LIMIT),
    )(both_feats, both_feats, both_feats, emb, w_txt)

    # nn.CrossEntropyLoss default reduction='mean'
    return jnp.sum(parts) / jnp.float32(B)


# ---------------------------------------------------------------------------
# Forward wrapper mirroring CIRPlus.forward (wo_bank=True branch)
# ---------------------------------------------------------------------------
def cirplus_forward(text_tokens, refer_image, target_image, params):
    B = refer_image.shape[0]

    # --- stand-in encode_image: flatten NCHW, cast to bf16 ONCE, and project
    #     BOTH image batches with a single tiled Pallas matmul (w_img streamed
    #     once, 2B MXU rows). w_img is already bf16 at param init.
    both = jnp.concatenate([refer_image.reshape(B, -1),
                            target_image.reshape(B, -1)], axis=0)
    both = both.astype(jnp.bfloat16)                                 # [2B, K]
    both_feats = pallas_matmul(both, params["w_img"])                # [2B, D] f32

    # --- stand-in encode_text: embedding lookup + mean pool (XLA glue);
    #     its tiny [B,E]@[E,D] projection is fused into the loss kernel.
    emb = jnp.take(params["tok_emb"], text_tokens, axis=0)           # [B, T, E]
    emb = jnp.mean(emb, axis=1).astype(jnp.bfloat16)                 # [B, E]

    # --- fused text-proj + combiner + normalize + infonce loss (bbc_loss);
    #     both_feats is passed once, refer/target halves split via BlockSpecs.
    bbc_loss = pallas_cirplus_bbc_loss(both_feats, emb, params["w_txt"])
    return {"bbc_loss": bbc_loss}


if __name__ == "__main__":
    key = jax.random.PRNGKey(0)
    k1, k2, k3, k4, k5, k6 = jax.random.split(key, 6)

    # small shapes consistent with the forward
    B, C, H, W = 8, 3, 16, 16          # images (NCHW)
    T, VOCAB, E = 8, 64, 128           # text tokens / embed dim
    D = 128                            # CLIP-like output_dim

    refer_image = jax.random.normal(k1, (B, C, H, W), jnp.float32)
    target_image = jax.random.normal(k2, (B, C, H, W), jnp.float32)
    text_tokens = jax.random.randint(k3, (B, T), 0, VOCAB)

    params = {
        # projection weights kept in bf16 at init (no per-call casts)
        "w_img": (jax.random.normal(k4, (C * H * W, D), jnp.float32)
                  / jnp.sqrt(float(C * H * W))).astype(jnp.bfloat16),
        "tok_emb": jax.random.normal(k5, (VOCAB, E), jnp.float32) * 0.02,
        "w_txt": (jax.random.normal(k6, (E, D), jnp.float32)
                  / jnp.sqrt(float(E))).astype(jnp.bfloat16),
    }

    loss = cirplus_forward(text_tokens, refer_image, target_image, params)
    jax.block_until_ready(loss["bbc_loss"])
    assert jnp.isfinite(loss["bbc_loss"])
    print("KERNEL_OK")
</pallas_src>

<mosaic_0001>
module attributes {stable_mosaic.version = 11 : i64} {
  func.func @_matmul_kernel(%arg0: i32, %arg1: i32, %arg2: i32, %arg3: memref<16x768xbf16, #tpu.memory_space<vmem>>, %arg4: memref<768x128xbf16, #tpu.memory_space<vmem>>, %arg5: memref<16x128xf32, #tpu.memory_space<vmem>>, %arg6: memref<16x128xf32, #tpu.memory_space<vmem>>) attributes {dimension_semantics = [#tpu.dimension_semantics<parallel>, #tpu.dimension_semantics<parallel>, #tpu.dimension_semantics<arbitrary>], iteration_bounds = array<i64: 1, 1, 1>, scalar_prefetch = 0 : i64, scratch_operands = 1 : i64, tpu.core_type = #tpu.core_type<tc>, window_params = [{transform_indices = @transform_0, window_bounds = array<i64: 16, 768>}, {transform_indices = @transform_1, window_bounds = array<i64: 768, 128>}, {transform_indices = @transform_2, window_bounds = array<i64: 16, 128>}]} {
    %c0_i32 = arith.constant 0 : i32
    %0 = arith.cmpi eq, %arg2, %c0_i32 : i32
    %1 = arith.extui %0 : i1 to i32
    %c0_i32_0 = arith.constant 0 : i32
    %2 = arith.cmpi ne, %1, %c0_i32_0 : i32
    scf.if %2 {
      %cst_10 = arith.constant 0.000000e+00 : f32
      %12 = vector.broadcast %cst_10 : f32 to vector<16x128xf32>
      %c0_11 = arith.constant 0 : index
      %c0_12 = arith.constant 0 : index
      %13 = vector.load %arg6[%c0_11, %c0_12] : memref<16x128xf32, #tpu.memory_space<vmem>>, vector<16x128xf32>
      tpu.vector_store %arg6[%c0_11, %c0_12], %12 {strides = array<i32>} : memref<16x128xf32, #tpu.memory_space<vmem>>, vector<16x128xf32>,
    } else {
    }
    %c0 = arith.constant 0 : index
    %c0_1 = arith.constant 0 : index
    %3 = vector.load %arg6[%c0, %c0_1] : memref<16x128xf32, #tpu.memory_space<vmem>>, vector<16x128xf32>
    %c0_2 = arith.constant 0 : index
    %c0_3 = arith.constant 0 : index
    %4 = vector.load %arg3[%c0_2, %c0_3] : memref<16x768xbf16, #tpu.memory_space<vmem>>, vector<16x768xbf16>
    %c0_4 = arith.constant 0 : index
    %c0_5 = arith.constant 0 : index
    %5 = vector.load %arg4[%c0_4, %c0_5] : memref<768x128xbf16, #tpu.memory_space<vmem>>, vector<768x128xbf16>
    %cst = arith.constant dense<0.000000e+00> : vector<16x128xf32>
    %6 = tpu.matmul %4, %5, %cst {dimension_numbers = #tpu.dot_dimension_numbers<[1], [0], [0], [1], [0, 0, 1, 1], [], []>} : vector<16x768xbf16>, vector<768x128xbf16>, vector<16x128xf32> -> vector<16x128xf32>
    %7 = arith.addf %3, %6 : vector<16x128xf32>
    %c0_6 = arith.constant 0 : index
    %c0_7 = arith.constant 0 : index
    %8 = vector.load %arg6[%c0_6, %c0_7] : memref<16x128xf32, #tpu.memory_space<vmem>>, vector<16x128xf32>
    tpu.vector_store %arg6[%c0_6, %c0_7], %7 {strides = array<i32>} : memref<16x128xf32, #tpu.memory_space<vmem>>, vector<16x128xf32>,
    %c0_i32_8 = arith.constant 0 : i32
    %9 = arith.cmpi eq, %arg2, %c0_i32_8 : i32
    %10 = arith.extui %9 : i1 to i32
    %c0_i32_9 = arith.constant 0 : i32
    %11 = arith.cmpi ne, %10, %c0_i32_9 : i32
    scf.if %11 {
      %c0_10 = arith.constant 0 : index
      %c0_11 = arith.constant 0 : index
      %12 = vector.load %arg6[%c0_10, %c0_11] : memref<16x128xf32, #tpu.memory_space<vmem>>, vector<16x128xf32>
      %c0_12 = arith.constant 0 : index
      %c0_13 = arith.constant 0 : index
      %13 = vector.load %arg5[%c0_12, %c0_13] : memref<16x128xf32, #tpu.memory_space<vmem>>, vector<16x128xf32>
      tpu.vector_store %arg5[%c0_12, %c0_13], %12 {strides = array<i32>} : memref<16x128xf32, #tpu.memory_space<vmem>>, vector<16x128xf32>,
    } else {
    }
    return
  }
  func.func @transform_0(%arg0: i32, %arg1: i32, %arg2: i32) -> (i32, i32) {
    %c0_i32 = arith.constant 0 : i32
    return %arg0, %arg2 : i32, i32
  }
  func.func @transform_1(%arg0: i32, %arg1: i32, %arg2: i32) -> (i32, i32) {
    %c0_i32 = arith.constant 0 : i32
    return %arg2, %arg1 : i32, i32
  }
  func.func @transform_2(%arg0: i32, %arg1: i32, %arg2: i32) -> (i32, i32) {
    %c0_i32 = arith.constant 0 : i32
    return %arg0, %arg1 : i32, i32
  }
}

</mosaic_0001>

<bundles_post_ra>
// kernel: tpu_custom_call.1
= control target key start
LH: loop header
LB: loop body
LE: loop exit
PB: predicated region body
PF: predicated region fallthrough
CT: control target
= control target key end

     0   :  { %7 = vsyncpa [#allocation4], 0  ;;  %s939_s0 = inlined_call_operand.hbm [shape: bf16[16,768], index: 0, kind: input, shape index: {}]   ;;  %s940_s1 = inlined_call_operand.hbm [shape: bf16[768,128], index: 1, kind: input, shape index: {}]   ;;  %s941_s2 = inlined_call_operand.hbm [shape: f32[16,128], index: 2, kind: output, shape index: {}]  }
   0x1   :  { %8 = vsyncpa [#allocation7], 0 }
   0x2   :  { %9 = vsyncpa [#allocation5], 0  ;;  %s879_s9 = smov [#allocation3]   ;;  %s807_s13 = scalar_lea.hbm %s939_s0, 768 }
   0x3   :  { %s15_s10 = sshll.u32 %s879_s9, 4  ;;  %p808_p0 = scmp.ne.s32.totalorder %s939_s0, %s807_s13  ;;  %s16_s10 = int_to_ptr.vmem [resolvable:$true] %s15_s10 }
   0x4   :  { %p811_p1 = scmp.lt.u32.totalorder %s807_s13, %s939_s0 }
   0x6   :  { %p813_p2 = pnand %p811_p1, %p808_p0 }
   0x8   :  { %816 = shalt.err (!%p813_p2)
}
   0x9   :  { %s817_s18 = scalar_lea.vmem %s16_s10, 768  ;;  %p822_p4 = scmp.lt.s32.totalorder %s16_s10, %s16_s10 }
   0xa   :  { %p818_p3 = scmp.ne.s32.totalorder %s16_s10, %s817_s18  ;;  %p823_p5 = scmp.lt.s32.totalorder %s817_s18, %s817_s18 }
   0xc   :  { %p824_p6 = por %p823_p5, %p822_p4 }
   0xe   :  { %p825_p7 = pnand %p824_p6, %p818_p3 }
  0x10   :  { %828 = shalt.err (!%p825_p7)
}
  0x11   :  { %s880_s19 = smov 384   ;;  %s881_s20 = smov 24  }
  0x12   :  { %21 = dma.hbm_to_vmem [thread:$0]  %s939_s0, 768, %s16_s10, [#allocation4], %s880_s19, %s880_s19, %s881_s20  }
  0x13   :  { %s882_s23 = smov [#allocation6]   ;;  %s829_s27 = scalar_lea.hbm %s940_s1, 6144 }
  0x14   :  { %s27_s24 = sshll.u32 %s882_s23, 4  ;;  %p830_p8 = scmp.ne.s32.totalorder %s940_s1, %s829_s27  ;;  %s28_s24 = int_to_ptr.vmem [resolvable:$true] %s27_s24 }
  0x15   :  { %p833_p9 = scmp.lt.u32.totalorder %s829_s27, %s940_s1 }
  0x17   :  { %p835_p10 = pnand %p833_p9, %p830_p8 }
  0x19   :  { %838 = shalt.err (!%p835_p10)
}
  0x1a   :  { %s839_s4 = scalar_lea.vmem %s28_s24, 6144  ;;  %p844_p12 = scmp.lt.s32.totalorder %s28_s24, %s28_s24 }
  0x1b   :  { %p840_p11 = scmp.ne.s32.totalorder %s28_s24, %s839_s4  ;;  %p845_p13 = scmp.lt.s32.totalorder %s839_s4, %s839_s4 }
  0x1d   :  { %p846_p0 = por %p845_p13, %p844_p12 }
  0x1f   :  { %p847_p1 = pnand %p846_p0, %p840_p11 }
  0x21   :  { %850 = shalt.err (!%p847_p1)
}
  0x22   :  { %s883_s0 = smov 64   ;;  %s884_s5 = smov 4  }
  0x23   :  { %33 = dma.hbm_to_vmem [thread:$0]  %s940_s1, 6144, %s28_s24, [#allocation7], %s883_s0, %s883_s0, %s884_s5  }
  0x24   :  { %873 = dma.done.wait [#allocation4], 768  }
  0x25   :  { %874 = vsyncadd [#allocation4], 4294966528 }
  0x26   :  { %875 = dma.done.wait [#allocation7], 6144  }
  0x27   :  { %876 = vsyncadd [#allocation7], 4294961152  ;;  %v750_v0 = vld [vmem:[#allocation6 + $0x40] sm:$0xff]   ;;  %v754_v4 = vld [vmem:[#allocation6 + $0x48] sm:$0xff]   ;;  %s885_s1 = smov [#allocation8]  }
  0x28   :  { %v751_v1 = vld [vmem:[#allocation6 + $0xc0] sm:$0xff]   ;;  %675 = vmatprep.subr.bf16.mxu0 %v750_v0  ;;  %v755_v5 = vld [vmem:[#allocation6 + $0xc8] sm:$0xff]   ;;  %v758_v8 = vld [vmem:[#allocation6 + $0x50] sm:$0xff]   ;;  %s608_s8 = sshll.u32 %s885_s1, 4  ;;  %s609_s8 = int_to_ptr.vmem [resolvable:$true] %s608_s8 }
  0x29   :  { %v752_v2 = vld [vmem:[#allocation6] sm:$0xff]   ;;  %697 = vmatprep.subr.bf16.mxu1 %v751_v1  ;;  %v756_v6 = vld [vmem:[#allocation6 + $0x8] sm:$0xff]   ;;  %v759_v9 = vld [vmem:[#allocation6 + $0xd0] sm:$0xff]   ;;  %s851_s9 = scalar_lea.vmem %s609_s8, 256  ;;  %p856_p3 = scmp.lt.s32.totalorder %s609_s8, %s609_s8 }
  0x2a   :  { %v753_v3 = vld [vmem:[#allocation6 + $0x80] sm:$0xff]   ;;  %676 = vmatpush3.bf16.msra.mxu0 %v752_v2  ;;  %v757_v7 = vld [vmem:[#allocation6 + $0x88] sm:$0xff]   ;;  %v760_v10 = vld [vmem:[#allocation6 + $0x10] sm:$0xff]   ;;  %p852_p2 = scmp.ne.s32.totalorder %s609_s8, %s851_s9  ;;  %p857_p4 = scmp.lt.s32.totalorder %s851_s9, %s851_s9 }
  0x2b   :  { %698 = vmatpush3.bf16.msra.mxu1 %v753_v3  ;;  %677 = vmatprep.subr.bf16.mxu0 %v754_v4  ;;  %v761_v11 = vld [vmem:[#allocation6 + $0x90] sm:$0xff]   ;;  %v762_v12 = vld [vmem:[#allocation6 + $0x58] sm:$0xff]   ;;  %v766_v16 = vld [vmem:[#allocation6 + $0x60] sm:$0xff]  }
  0x2c   :  { %699 = vmatprep.subr.bf16.mxu1 %v755_v5  ;;  %v763_v13 = vld [vmem:[#allocation6 + $0xd8] sm:$0xff]   ;;  %v767_v17 = vld [vmem:[#allocation6 + $0xe0] sm:$0xff]   ;;  %v770_v20 = vld [vmem:[#allocation6 + $0x68] sm:$0xff]   ;;  %p858_p5 = por %p857_p4, %p856_p3 }
  0x2d   :  { %v764_v14 = vld [vmem:[#allocation6 + $0x18] sm:$0xff]   ;;  %v768_v18 = vld [vmem:[#allocation6 + $0x20] sm:$0xff]   ;;  %v771_v21 = vld [vmem:[#allocation6 + $0xe8] sm:$0xff]  }
  0x2e   :  { %678 = vmatpush3.bf16.msra.mxu0 %v756_v6  ;;  %v765_v15 = vld [vmem:[#allocation6 + $0x98] sm:$0xff]   ;;  %v769_v19 = vld [vmem:[#allocation6 + $0xa0] sm:$0xff]   ;;  %v772_v22 = vld [vmem:[#allocation6 + $0x28] sm:$0xff]   ;;  %p859_p6 = pnand %p858_p5, %p852_p2 }
  0x2f   :  { %700 = vmatpush3.bf16.msra.mxu1 %v757_v7  ;;  %679 = vmatprep.subr.bf16.mxu0 %v758_v8  ;;  %v773_v23 = vld [vmem:[#allocation6 + $0xa8] sm:$0xff]   ;;  %v774_v24 = vld [vmem:[#allocation6 + $0x70] sm:$0xff]   ;;  %v778_v28 = vld [vmem:[#allocation6 + $0x78] sm:$0xff]  }
  0x30   :  { %701 = vmatprep.subr.bf16.mxu1 %v759_v9  ;;  %v775_v25 = vld [vmem:[#allocation6 + $0xf0] sm:$0xff]   ;;  %v779_v29 = vld [vmem:[#allocation6 + $0xf8] sm:$0xff]   ;;  %v788_v36 = vld [vmem:[#allocation6 + $0x140] sm:$0xff]  }
  0x31   :  { %v776_v26 = vld [vmem:[#allocation6 + $0x30] sm:$0xff]   ;;  %v780_v30 = vld [vmem:[#allocation6 + $0x38] sm:$0xff]   ;;  %v789_v37 = vld [vmem:[#allocation6 + $0x100] sm:$0xff]  }
  0x32   :  { %680 = vmatpush3.bf16.msra.mxu0 %v760_v10  ;;  %v777_v27 = vld [vmem:[#allocation6 + $0xb0] sm:$0xff]   ;;  %v781_v31 = vld [vmem:[#allocation6 + $0xb8] sm:$0xff]   ;;  %v790_v38 = vld [vmem:[#allocation6 + $0x148] sm:$0xff]  }
  0x33   :  { %702 = vmatpush3.bf16.msra.mxu1 %v761_v11  ;;  %681 = vmatprep.subr.bf16.mxu0 %v762_v12  ;;  %v782_v32 = vld [vmem:[#allocation3] ss:$24 sps:$4 sm:$0xff]   ;;  %v784_v33 = vld [vmem:[#allocation3 + $0x4] ss:$24 sps:$4 sm:$0xff]   ;;  %v794_v42 = vld [vmem:[#allocation6 + $0x158] sm:$0xff]  }
  0x34   :  { %703 = vmatprep.subr.bf16.mxu1 %v763_v13  ;;  %v785_v34 = vld [vmem:[#allocation3 + $0x8] ss:$24 sps:$4 sm:$0xff]   ;;  %v787_v35 = vld [vmem:[#allocation3 + $0xc] ss:$24 sps:$4 sm:$0xff]   ;;  %501 = vmatprep.mubr.bf16.mxu0 %v784_v33  ;;  %v791_v39 = vld [vmem:[#allocation6 + $0x108] sm:$0xff]  }
  0x35   :  { %542 = vmatprep.mubr.bf16.mxu1 %v787_v35  ;;  %v792_v40 = vld [vmem:[#allocation6 + $0x150] sm:$0xff]   ;;  %v795_v43 = vld [vmem:[#allocation6 + $0x118] sm:$0xff]   ;;  %v796_v44 = vld [vmem:[#allocation6 + $0x160] sm:$0xff]  }
  0x36   :  { %682 = vmatpush3.bf16.msra.mxu0 %v764_v14  ;;  %v793_v41 = vld [vmem:[#allocation6 + $0x110] sm:$0xff]   ;;  %v797_v45 = vld [vmem:[#allocation6 + $0x120] sm:$0xff]   ;;  %v798_v46 = vld [vmem:[#allocation6 + $0x168] sm:$0xff]  }
  0x37   :  { %704 = vmatpush3.bf16.msra.mxu1 %v765_v15  ;;  %683 = vmatprep.subr.bf16.mxu0 %v766_v16  ;;  %v806_v47 = vld [vmem:[#allocation3 + $0x14] ss:$24 sps:$4 sm:$0xff]   ;;  %v799_v48 = vld [vmem:[#allocation6 + $0x128] sm:$0xff]   ;;  %v800_v49 = vld [vmem:[#allocation6 + $0x170] sm:$0xff]  }
  0x38   :  { %705 = vmatprep.subr.bf16.mxu1 %v767_v17  ;;  %v801_v50 = vld [vmem:[#allocation6 + $0x130] sm:$0xff]   ;;  %v802_v51 = vld [vmem:[#allocation6 + $0x178] sm:$0xff]  }
  0x39   :  { %v803_v52 = vld [vmem:[#allocation6 + $0x138] sm:$0xff]  }
  0x3a   :  { %684 = vmatpush3.bf16.msra.mxu0 %v768_v18  ;;  %v804_v53 = vld [vmem:[#allocation3 + $0x10] ss:$24 sps:$4 sm:$0xff]  }
  0x3b   :  { %706 = vmatpush3.bf16.msra.mxu1 %v769_v19  ;;  %685 = vmatprep.subr.bf16.mxu0 %v770_v20 }
  0x3c   :  { %707 = vmatprep.subr.bf16.mxu1 %v771_v21 }
  0x3e   :  { %686 = vmatpush3.bf16.msra.mxu0 %v772_v22 }
  0x3f   :  { %708 = vmatpush3.bf16.msra.mxu1 %v773_v23  ;;  %687 = vmatprep.subr.bf16.mxu0 %v774_v24 }
  0x40   :  { %709 = vmatprep.subr.bf16.mxu1 %v775_v25 }
  0x42   :  { %688 = vmatpush3.bf16.msra.mxu0 %v776_v26 }
  0x43   :  { %710 = vmatpush3.bf16.msra.mxu1 %v777_v27  ;;  %689 = vmatprep.subr.bf16.mxu0 %v778_v28 }
  0x44   :  { %711 = vmatprep.subr.bf16.mxu1 %v779_v29 }
  0x46   :  { %690 = vmatpush3.bf16.msra.mxu0 %v780_v30 }
  0x47   :  { %712 = vmatpush3.bf16.msra.mxu1 %v781_v31  ;;  %719 = vmatprep.subr.bf16.mxu0 %v788_v36 }
  0x49   :  { %502 = vmatmul.mubr.bf16.vlgmr.msra.gmra.mrb[0].mxu0 %v782_v32 }
  0x4a   :  { %543 = vmatmul.mubr.bf16.vlgmr.msra.gmra.mrb[0].mxu1 %v785_v34  ;;  %720 = vmatpush3.bf16.msra.mxu0 %v789_v37 }
  0x4b   :  { %721 = vmatprep.subr.bf16.mxu0 %v790_v38  ;;  %583 = vmatprep.mubr.bf16.mxu0 %v806_v47 }
  0x4e   :  { %722 = vmatpush3.bf16.msra.mxu0 %v791_v39 }
  0x4f   :  { %723 = vmatprep.subr.bf16.mxu0 %v792_v40 }
  0x52   :  { %724 = vmatpush3.bf16.msra.mxu0 %v793_v41 }
  0x53   :  { %725 = vmatprep.subr.bf16.mxu0 %v794_v42 }
  0x56   :  { %726 = vmatpush3.bf16.msra.mxu0 %v795_v43 }
  0x57   :  { %727 = vmatprep.subr.bf16.mxu0 %v796_v44 }
  0x5a   :  { %728 = vmatpush3.bf16.msra.mxu0 %v797_v45 }
  0x5b   :  { %729 = vmatprep.subr.bf16.mxu0 %v798_v46 }
  0x5e   :  { %730 = vmatpush3.bf16.msra.mxu0 %v799_v48 }
  0x5f   :  { %731 = vmatprep.subr.bf16.mxu0 %v800_v49 }
  0x62   :  { %732 = vmatpush3.bf16.msra.mxu0 %v801_v50 }
  0x63   :  { %733 = vmatprep.subr.bf16.mxu0 %v802_v51 }
  0x66   :  { %734 = vmatpush3.bf16.msra.mxu0 %v803_v52 }
  0x69   :  { %584 = vmatmul.mubr.bf16.vlgmr.msra.gmra.mrb[4].mxu0 %v804_v53 }
 0x11c   :  { %v691_v54 = vpop.f32.mrb[0].mxu0 }
 0x11d   :  { %v713_v55 = vpop.f32.mrb[0].mxu1  ;;  %v692_v56 = vpop.f32.mrb[1].mxu0 }
 0x11e   :  { %v693_v57 = vadd.f32 %v692_v56, %v691_v54  ;;  %v714_v58 = vpop.f32.mrb[1].mxu1  ;;  %v694_v59 = vpop.f32.mrb[2].mxu0 }
 0x11f   :  { %v715_v60 = vadd.f32 %v714_v58, %v713_v55  ;;  %v716_v61 = vpop.f32.mrb[2].mxu1  ;;  %v695_v62 = vpop.f32.mrb[3].mxu0 }
 0x120   :  { %v696_v63 = vadd.f32 %v695_v62, %v694_v59  ;;  %v717_v0 = vpop.f32.mrb[3].mxu1 }
 0x121   :  { %v545_v1 = vadd.f32 %v715_v60, %v693_v57  ;;  %v718_v2 = vadd.f32 %v717_v0, %v716_v61 }
 0x123   :  { %v548_v3 = vadd.f32 %v718_v2, %v696_v63 }
 0x13c   :  { %v735_v4 = vpop.f32.mrb[4].mxu0 }
 0x13d   :  { %v736_v5 = vpop.f32.mrb[5].mxu0 }
 0x13e   :  { %v737_v6 = vadd.f32 %v736_v5, %v735_v4  ;;  %v738_v7 = vpop.f32.mrb[6].mxu0 }
 0x13f   :  { %v739_v8 = vpop.f32.mrb[7].mxu0 }
 0x140   :  { %v586_v9 = vadd.f32 %v737_v6, %v545_v1  ;;  %v740_v10 = vadd.f32 %v739_v8, %v738_v7 }
 0x142   :  { %601 = vst [vmem:[#allocation8] sm:$0xff] %v586_v9  ;;  %v589_v11 = vadd.f32 %v740_v10, %v548_v3 }
 0x144   :  { %602 = vst [vmem:[#allocation8 + $0x8] sm:$0xff] %v589_v11 }
 0x145   :  { %862 = shalt.err (!%p859_p6)
}
 0x146   :  { %s863_s12 = scalar_lea.hbm %s941_s2, 256 }
 0x147   :  { %p864_p7 = scmp.ne.s32.totalorder %s941_s2, %s863_s12  ;;  %p867_p8 = scmp.lt.u32.totalorder %s863_s12, %s941_s2 }
 0x149   :  { %p869_p9 = pnand %p867_p8, %p864_p7 }
 0x14b   :  { %872 = shalt.err (!%p869_p9)
}
 0x14c   :  { %s886_s17 = smov 128   ;;  %s887_s18 = smov 8  }
 0x14d   :  { %614 = dma.vmem_to_hbm [thread:$0]  %s609_s8, 256, %s941_s2, [#allocation5], %s886_s17, %s886_s17, %s887_s18  }
 0x14e   :  { %877 = dma.done.wait [#allocation5], 256  }
 0x14f   :  { %878 = vsyncadd [#allocation5], 4294967040 }
 0x150   :  { %618 = vsyncpa [#allocation4], 1 }
 0x151   :  { %619 = vsyncpa [#allocation7], 1 }
 0x152   :  { %620 = vsyncpa [#allocation5], 1 }

</bundles_post_ra>
